<compile_context>
chip_gen: v7x
topology: tpu7x:2x2x1
jax: 0.10.0
libtpu: 0.0.40
codegen_flags: <defaults>
</compile_context>

<pallas_src>
import functools

import jax
import jax.numpy as jnp
from jax.experimental import pallas as pl
from jax.experimental.pallas import tpu as pltpu

K = 784        # 28*28 input features; kept UNPADDED in HBM (Mosaic lane-pads in VMEM only)
H_PAD = 128    # hidden 64  -> 128 (lane-dense, padded once at init)
O_PAD = 128    # out    10  -> 128 (lane-dense output slab; sliced to [:, :10] after)


def _cdiv(a, b):
    return (a + b - 1) // b


def _round_up(x, m):
    return ((x + m - 1) // m) * m


def mlp_kernel(x_ref, w1_ref, b1_ref, w2_ref, b2_ref, out_ref):
    # x_ref:  (TM, 784)    w1_ref: (784, 128)  b1_ref: (1, 128)
    # w2_ref: (128, 128)   b2_ref: (1, 128)    out_ref: (TM, 128)
    h = jnp.dot(x_ref[...], w1_ref[...], preferred_element_type=jnp.float32)
    h = jnp.maximum(h + b1_ref[...], 0.0)          # bias broadcast + ReLU on VPU
    y = jnp.dot(h, w2_ref[...], preferred_element_type=jnp.float32)
    out_ref[...] = (y + b2_ref[...]).astype(out_ref.dtype)


@functools.partial(jax.jit, static_argnames=("tm",))
def mlp_forward(x_nchw, w1_p, b1_p, w2_p, b2_p, *, tm=1024):
    """x_nchw: (B, 1, 28, 28) f32. Params are the PRE-PADDED arrays from
    prepare_params(). Returns logits (B, 10) f32."""
    B = x_nchw.shape[0]
    x_flat = x_nchw.reshape(B, K)                  # (B, 784) row-major == nn.Flatten

    # ---- tile / grid sizing (steps first, then TM; keeps batch padding minimal) ----
    steps = _cdiv(B, tm)
    if B >= 16:
        steps = max(steps, 2)                      # v7x: >=2 grid steps so both TCs work
        steps += steps % 2                         # even step count -> balanced TC load
    TM = _round_up(_cdiv(B, steps), 8)             # sublane-aligned batch tile
    B_pad = steps * TM

    if B_pad != B:
        x_flat = jnp.pad(x_flat, ((0, B_pad - B), (0, 0)))

    cost = pl.CostEstimate(
        flops=2 * B_pad * (K * H_PAD + H_PAD * O_PAD),
        transcendentals=0,
        bytes_accessed=(B_pad * K * 4 + B_pad * O_PAD * 4
                        + K * H_PAD * 4 + H_PAD * O_PAD * 4
                        + (H_PAD + O_PAD) * 4),
    )

    # VMEM budget per grid step (double-buffered x + out, resident weights):
    #   TM*896*4*2 + TM*128*4*2 + ~0.5 MiB  ->  ~8.8 MiB at TM=1024, ~17 MiB at TM=2048.
    vmem_limit = (28 << 20) if TM > 1024 else None

    out_padded = pl.pallas_call(
        mlp_kernel,
        out_shape=jax.ShapeDtypeStruct((B_pad, O_PAD), jnp.float32),
        grid_spec=pl.GridSpec(
            grid=(steps,),
            in_specs=[
                # Full-extent last dim (784): no HBM-side K padding needed.
                pl.BlockSpec((TM, K), lambda i: (i, 0)),         # batch-tiled x stream
                pl.BlockSpec((K, H_PAD), lambda i: (0, 0)),      # VMEM-resident weights
                pl.BlockSpec((1, H_PAD), lambda i: (0, 0)),
                pl.BlockSpec((H_PAD, O_PAD), lambda i: (0, 0)),
                pl.BlockSpec((1, O_PAD), lambda i: (0, 0)),
            ],
            out_specs=pl.BlockSpec((TM, O_PAD), lambda i: (i, 0)),
        ),
        compiler_params=pltpu.CompilerParams(
            dimension_semantics=("parallel",),     # batch axis: shard across TCs on v7x
            vmem_limit_bytes=vmem_limit,
        ),
        cost_estimate=cost,
    )(x_flat, w1_p, b1_p, w2_p, b2_p)

    return out_padded[:B, :10]


def init_params(key):
    """Deterministic parameter init matching the PyTorch module's shapes.
    PyTorch Linear weight is (out_features, in_features); we store the transpose
    so the kernel does x @ W directly."""
    k1, k2, k3, k4 = jax.random.split(key, 4)
    bound1 = 1.0 / jnp.sqrt(784.0)
    bound2 = 1.0 / jnp.sqrt(64.0)
    w1 = jax.random.uniform(k1, (784, 64), jnp.float32, -bound1, bound1)
    b1 = jax.random.uniform(k2, (64,), jnp.float32, -bound1, bound1)
    w2 = jax.random.uniform(k3, (64, 10), jnp.float32, -bound2, bound2)
    b2 = jax.random.uniform(k4, (10,), jnp.float32, -bound2, bound2)
    return w1, b1, w2, b2


def prepare_params(w1, b1, w2, b2):
    """One-time lane-dense padding of the params (hoisted out of the per-call path).
    Zero padding + relu(0)=0 keeps numerics exact."""
    w1_p = jnp.zeros((K, H_PAD), jnp.float32).at[:, :64].set(w1)
    b1_p = jnp.zeros((1, H_PAD), jnp.float32).at[0, :64].set(b1)
    w2_p = jnp.zeros((H_PAD, O_PAD), jnp.float32).at[:64, :10].set(w2)
    b2_p = jnp.zeros((1, O_PAD), jnp.float32).at[0, :10].set(b2)
    return w1_p, b1_p, w2_p, b2_p


if __name__ == "__main__":
    key = jax.random.PRNGKey(0)
    kx, kp = jax.random.split(key)

    # MNIST-shaped input: batch=8, 1 channel, 28x28 (NCHW like PyTorch).
    x = jax.random.normal(kx, (8, 1, 28, 28), dtype=jnp.float32)
    w1, b1, w2, b2 = init_params(kp)
    w1_p, b1_p, w2_p, b2_p = prepare_params(w1, b1, w2, b2)   # padded once, reused every call

    out = mlp_forward(x, w1_p, b1_p, w2_p, b2_p)
    out = jax.block_until_ready(out)

    # Reference check against plain JAX (exact f32 path, no bf16 anywhere).
    x_flat = x.reshape(x.shape[0], -1)
    ref = jnp.maximum(x_flat @ w1 + b1, 0.0) @ w2 + b2
    assert out.shape == (8, 10)
    assert jnp.allclose(out, ref, atol=1e-4, rtol=1e-4)

    print("KERNEL_OK")
</pallas_src>

<mosaic_0001>
module attributes {stable_mosaic.version = 11 : i64} {
  func.func @mlp_kernel(%arg0: i32, %arg1: memref<8x784xf32, #tpu.memory_space<vmem>>, %arg2: memref<784x128xf32, #tpu.memory_space<vmem>>, %arg3: memref<1x128xf32, #tpu.memory_space<vmem>>, %arg4: memref<128x128xf32, #tpu.memory_space<vmem>>, %arg5: memref<1x128xf32, #tpu.memory_space<vmem>>, %arg6: memref<8x128xf32, #tpu.memory_space<vmem>>) attributes {dimension_semantics = [#tpu.dimension_semantics<parallel>], iteration_bounds = array<i64: 1>, scalar_prefetch = 0 : i64, scratch_operands = 0 : i64, tpu.core_type = #tpu.core_type<tc>, window_params = [{transform_indices = @transform_0, window_bounds = array<i64: 8, 784>}, {pipeline_mode = #tpu.pipeline_mode<synchronous>, transform_indices = @transform_1, window_bounds = array<i64: 784, 128>}, {pipeline_mode = #tpu.pipeline_mode<synchronous>, transform_indices = @transform_2, window_bounds = array<i64: 1, 128>}, {pipeline_mode = #tpu.pipeline_mode<synchronous>, transform_indices = @transform_3, window_bounds = array<i64: 128, 128>}, {pipeline_mode = #tpu.pipeline_mode<synchronous>, transform_indices = @transform_4, window_bounds = array<i64: 1, 128>}, {transform_indices = @transform_5, window_bounds = array<i64: 8, 128>}]} {
    %c0 = arith.constant 0 : index
    %c0_0 = arith.constant 0 : index
    %0 = vector.load %arg1[%c0, %c0_0] : memref<8x784xf32, #tpu.memory_space<vmem>>, vector<8x784xf32>
    %c0_1 = arith.constant 0 : index
    %c0_2 = arith.constant 0 : index
    %1 = vector.load %arg2[%c0_1, %c0_2] : memref<784x128xf32, #tpu.memory_space<vmem>>, vector<784x128xf32>
    %cst = arith.constant dense<0.000000e+00> : vector<8x128xf32>
    %2 = tpu.matmul %0, %1, %cst {dimension_numbers = #tpu.dot_dimension_numbers<[1], [0], [0], [1], [0, 0, 1, 1], [], []>} : vector<8x784xf32>, vector<784x128xf32>, vector<8x128xf32> -> vector<8x128xf32>
    %c0_3 = arith.constant 0 : index
    %c0_4 = arith.constant 0 : index
    %3 = vector.load %arg3[%c0_3, %c0_4] : memref<1x128xf32, #tpu.memory_space<vmem>>, vector<1x128xf32>
    %4 = vector.broadcast %3 : vector<1x128xf32> to vector<8x128xf32>
    %5 = arith.addf %2, %4 : vector<8x128xf32>
    %cst_5 = arith.constant 0.000000e+00 : f32
    %6 = vector.broadcast %cst_5 : f32 to vector<8x128xf32>
    %7 = arith.maximumf %5, %6 : vector<8x128xf32>
    %c0_6 = arith.constant 0 : index
    %c0_7 = arith.constant 0 : index
    %8 = vector.load %arg4[%c0_6, %c0_7] : memref<128x128xf32, #tpu.memory_space<vmem>>, vector<128x128xf32>
    %cst_8 = arith.constant dense<0.000000e+00> : vector<8x128xf32>
    %9 = tpu.matmul %7, %8, %cst_8 {dimension_numbers = #tpu.dot_dimension_numbers<[1], [0], [0], [1], [0, 0, 1, 1], [], []>} : vector<8x128xf32>, vector<128x128xf32>, vector<8x128xf32> -> vector<8x128xf32>
    %c0_9 = arith.constant 0 : index
    %c0_10 = arith.constant 0 : index
    %10 = vector.load %arg5[%c0_9, %c0_10] : memref<1x128xf32, #tpu.memory_space<vmem>>, vector<1x128xf32>
    %11 = vector.broadcast %10 : vector<1x128xf32> to vector<8x128xf32>
    %12 = arith.addf %9, %11 : vector<8x128xf32>
    %c0_11 = arith.constant 0 : index
    %c0_12 = arith.constant 0 : index
    %13 = vector.load %arg6[%c0_11, %c0_12] : memref<8x128xf32, #tpu.memory_space<vmem>>, vector<8x128xf32>
    tpu.vector_store %arg6[%c0_11, %c0_12], %12 {strides = array<i32>} : memref<8x128xf32, #tpu.memory_space<vmem>>, vector<8x128xf32>,
    return
  }
  func.func @transform_0(%arg0: i32) -> (i32, i32) {
    %c0_i32 = arith.constant 0 : i32
    %c0_i32_0 = arith.constant 0 : i32
    return %arg0, %c0_i32 : i32, i32
  }
  func.func @transform_1(%arg0: i32) -> (i32, i32) {
    %c0_i32 = arith.constant 0 : i32
    %c0_i32_0 = arith.constant 0 : i32
    %c0_i32_1 = arith.constant 0 : i32
    return %c0_i32, %c0_i32_0 : i32, i32
  }
  func.func @transform_2(%arg0: i32) -> (i32, i32) {
    %c0_i32 = arith.constant 0 : i32
    %c0_i32_0 = arith.constant 0 : i32
    %c0_i32_1 = arith.constant 0 : i32
    return %c0_i32, %c0_i32_0 : i32, i32
  }
  func.func @transform_3(%arg0: i32) -> (i32, i32) {
    %c0_i32 = arith.constant 0 : i32
    %c0_i32_0 = arith.constant 0 : i32
    %c0_i32_1 = arith.constant 0 : i32
    return %c0_i32, %c0_i32_0 : i32, i32
  }
  func.func @transform_4(%arg0: i32) -> (i32, i32) {
    %c0_i32 = arith.constant 0 : i32
    %c0_i32_0 = arith.constant 0 : i32
    %c0_i32_1 = arith.constant 0 : i32
    return %c0_i32, %c0_i32_0 : i32, i32
  }
  func.func @transform_5(%arg0: i32) -> (i32, i32) {
    %c0_i32 = arith.constant 0 : i32
    %c0_i32_0 = arith.constant 0 : i32
    return %arg0, %c0_i32 : i32, i32
  }
}

</mosaic_0001>

<bundles_post_ra>
// kernel: mlp_forward.1
= control target key start
LH: loop header
LB: loop body
LE: loop exit
PB: predicated region body
PF: predicated region fallthrough
CT: control target
= control target key end

     0   :  { %10 = vsyncpa [#allocation3], 0  ;;  %s1280_s0 = inlined_call_operand.vmem [shape: f32[8,784], index: 0, kind: input, shape index: {}]   ;;  %s1281_s1 = inlined_call_operand.vmem [shape: f32[784,128], index: 1, kind: input, shape index: {}]   ;;  %s1282_s2 = inlined_call_operand.vmem [shape: f32[1,128], index: 2, kind: input, shape index: {}]   ;;  %s1283_s3 = inlined_call_operand.hbm [shape: f32[128,128], index: 3, kind: input, shape index: {}]   ;;  %s1284_s4 = inlined_call_operand.vmem [shape: f32[1,128], index: 4, kind: input, shape index: {}]   ;;  %s1285_s5 = inlined_call_operand.hbm [shape: f32[8,128], index: 5, kind: output, shape index: {}]  }
   0x1   :  { %11 = vsyncpa [#allocation4], 0  ;;  %s889_s18 = smov [#allocation2]   ;;  %s841_s22 = scalar_lea.hbm %s1283_s3, 2048 }
   0x2   :  { %s23_s19 = sshll.u32 %s889_s18, 4  ;;  %p842_p0 = scmp.ne.s32.totalorder %s1283_s3, %s841_s22  ;;  %s24_s19 = int_to_ptr.vmem [resolvable:$true] %s23_s19 }
   0x3   :  { %p845_p1 = scmp.lt.u32.totalorder %s841_s22, %s1283_s3 }
   0x5   :  { %p847_p2 = pnand %p845_p1, %p842_p0 }
   0x7   :  { %850 = shalt.err (!%p847_p2)
}
   0x8   :  { %s851_s27 = scalar_lea.vmem %s24_s19, 2048  ;;  %p856_p4 = scmp.lt.s32.totalorder %s24_s19, %s24_s19 }
   0x9   :  { %p852_p3 = scmp.ne.s32.totalorder %s24_s19, %s851_s27  ;;  %p857_p5 = scmp.lt.s32.totalorder %s851_s27, %s851_s27 }
   0xb   :  { %p858_p6 = por %p857_p5, %p856_p4 }
   0xd   :  { %p859_p7 = pnand %p858_p6, %p852_p3 }
   0xf   :  { %862 = shalt.err (!%p859_p7)
}
  0x10   :  { %s890_s28 = smov 128   ;;  %s891_s29 = smov 8  }
  0x11   :  { %29 = dma.hbm_to_vmem [thread:$0]  %s1283_s3, 2048, %s24_s19, [#allocation3], %s890_s28, %s890_s28, %s891_s29  }
  0x12   :  { %885 = dma.done.wait [#allocation3], 2048  }
  0x13   :  { %886 = vsyncadd [#allocation3], 4294965248  ;;  %v58_v0 = vld [vmem:[%s1281_s1 + $0x80] sm:$0xff]  ;;  %v59_v1 = vld [vmem:[%s1281_s1 + $0x88] sm:$0xff]  ;;  %vm893_vm0 = vmmov 0   ;;  %vm147_vm1 = vcmask 130048  }
  0x14   :  { %v42_v2 = vld [vmem:[%s1281_s1] sm:$0xff]  ;;  %v711_v3 = vpack.c.bf16 %v59_v1, %v58_v0  ;;  %v43_v4 = vld [vmem:[%s1281_s1 + $0x8] sm:$0xff]  ;;  %v60_v11 = vld [vmem:[%s1281_s1 + $0x90] sm:$0xff] }
  0x15   :  { %v90_v5 = vld [vmem:[%s1281_s1 + $0x180] sm:$0xff]  ;;  %v91_v6 = vld [vmem:[%s1281_s1 + $0x188] sm:$0xff]  ;;  %v713_v7 = vpack.c.bf16 %v43_v4, %v42_v2  ;;  %v61_v13 = vld [vmem:[%s1281_s1 + $0x98] sm:$0xff] }
  0x16   :  { %v743_v8 = vpack.c.bf16 %v91_v6, %v90_v5  ;;  %v74_v9 = vld [vmem:[%s1281_s1 + $0x100] sm:$0xff]  ;;  %v75_v10 = vld [vmem:[%s1281_s1 + $0x108] sm:$0xff]  ;;  %712 = vmatprep.subr.bf16.mxu0 %v711_v3  ;;  %v44_v14 = vld [vmem:[%s1281_s1 + $0x10] sm:$0xff]  ;;  %v715_v16 = vpack.c.bf16 %v61_v13, %v60_v11 }
  0x17   :  { %v745_v12 = vpack.c.bf16 %v75_v10, %v74_v9  ;;  %v45_v15 = vld [vmem:[%s1281_s1 + $0x18] sm:$0xff]  ;;  %714 = vmatpush3.bf16.msra.mxu0 %v713_v7  ;;  %v92_v18 = vld [vmem:[%s1281_s1 + $0x190] sm:$0xff]  ;;  %v62_v23 = vld [vmem:[%s1281_s1 + $0xa0] sm:$0xff] }
  0x18   :  { %744 = vmatprep.subr.bf16.mxu1 %v743_v8  ;;  %v717_v17 = vpack.c.bf16 %v45_v15, %v44_v14  ;;  %v93_v19 = vld [vmem:[%s1281_s1 + $0x198] sm:$0xff]  ;;  %v76_v20 = vld [vmem:[%s1281_s1 + $0x110] sm:$0xff]  ;;  %v63_v24 = vld [vmem:[%s1281_s1 + $0xa8] sm:$0xff]  ;;  %716 = vmatprep.subr.bf16.mxu0 %v715_v16 }
  0x19   :  { %746 = vmatpush3.bf16.msra.mxu1 %v745_v12  ;;  %v747_v21 = vpack.c.bf16 %v93_v19, %v92_v18  ;;  %v77_v22 = vld [vmem:[%s1281_s1 + $0x118] sm:$0xff]  ;;  %v719_v26 = vpack.c.bf16 %v63_v24, %v62_v23  ;;  %v46_v27 = vld [vmem:[%s1281_s1 + $0x20] sm:$0xff]  ;;  %v47_v28 = vld [vmem:[%s1281_s1 + $0x28] sm:$0xff] }
  0x1a   :  { %v749_v25 = vpack.c.bf16 %v77_v22, %v76_v20  ;;  %v94_v29 = vld [vmem:[%s1281_s1 + $0x1a0] sm:$0xff]  ;;  %v95_v30 = vld [vmem:[%s1281_s1 + $0x1a8] sm:$0xff]  ;;  %v721_v33 = vpack.c.bf16 %v47_v28, %v46_v27  ;;  %v64_v35 = vld [vmem:[%s1281_s1 + $0xb0] sm:$0xff] }
  0x1b   :  { %748 = vmatprep.subr.bf16.mxu1 %v747_v21  ;;  %v78_v31 = vld [vmem:[%s1281_s1 + $0x120] sm:$0xff]  ;;  %v79_v32 = vld [vmem:[%s1281_s1 + $0x128] sm:$0xff]  ;;  %718 = vmatpush3.bf16.msra.mxu0 %v717_v17  ;;  %v751_v34 = vpack.c.bf16 %v95_v30, %v94_v29  ;;  %v65_v36 = vld [vmem:[%s1281_s1 + $0xb8] sm:$0xff] }
  0x1c   :  { %v48_v37 = vld [vmem:[%s1281_s1 + $0x30] sm:$0xff]  ;;  %720 = vmatprep.subr.bf16.mxu0 %v719_v26  ;;  %v753_v38 = vpack.c.bf16 %v79_v32, %v78_v31  ;;  %v723_v39 = vpack.c.bf16 %v65_v36, %v64_v35  ;;  %v49_v40 = vld [vmem:[%s1281_s1 + $0x38] sm:$0xff]  ;;  %v66_v46 = vld [vmem:[%s1281_s1 + $0xc0] sm:$0xff] }
  0x1d   :  { %750 = vmatpush3.bf16.msra.mxu1 %v749_v25  ;;  %v96_v41 = vld [vmem:[%s1281_s1 + $0x1b0] sm:$0xff]  ;;  %v97_v42 = vld [vmem:[%s1281_s1 + $0x1b8] sm:$0xff]  ;;  %v67_v47 = vld [vmem:[%s1281_s1 + $0xc8] sm:$0xff]  ;;  %v725_v48 = vpack.c.bf16 %v49_v40, %v48_v37 }
  0x1e   :  { %752 = vmatprep.subr.bf16.mxu1 %v751_v34  ;;  %v755_v43 = vpack.c.bf16 %v97_v42, %v96_v41  ;;  %v80_v44 = vld [vmem:[%s1281_s1 + $0x130] sm:$0xff]  ;;  %v81_v45 = vld [vmem:[%s1281_s1 + $0x138] sm:$0xff]  ;;  %v98_v49 = vld [vmem:[%s1281_s1 + $0x1c0] sm:$0xff]  ;;  %v727_v52 = vpack.c.bf16 %v67_v47, %v66_v46 }
  0x1f   :  { %722 = vmatpush3.bf16.msra.mxu0 %v721_v33  ;;  %v99_v50 = vld [vmem:[%s1281_s1 + $0x1c8] sm:$0xff]  ;;  %v757_v51 = vpack.c.bf16 %v81_v45, %v80_v44  ;;  %v50_v53 = vld [vmem:[%s1281_s1 + $0x40] sm:$0xff]  ;;  %v68_v58 = vld [vmem:[%s1281_s1 + $0xd0] sm:$0xff] }
  0x20   :  { %724 = vmatprep.subr.bf16.mxu0 %v723_v39  ;;  %v51_v54 = vld [vmem:[%s1281_s1 + $0x48] sm:$0xff]  ;;  %v82_v55 = vld [vmem:[%s1281_s1 + $0x140] sm:$0xff]  ;;  %v759_v56 = vpack.c.bf16 %v99_v50, %v98_v49  ;;  %v69_v59 = vld [vmem:[%s1281_s1 + $0xd8] sm:$0xff]  ;;  %v892_v50 = vmov 0.0|0.0  }
  0x21   :  { %754 = vmatpush3.bf16.msra.mxu1 %v753_v38  ;;  %v83_v57 = vld [vmem:[%s1281_s1 + $0x148] sm:$0xff]  ;;  %v100_v60 = vld [vmem:[%s1281_s1 + $0x1d0] sm:$0xff]  ;;  %v101_v61 = vld [vmem:[%s1281_s1 + $0x1d8] sm:$0xff]  ;;  %v729_v62 = vpack.c.bf16 %v51_v54, %v50_v53  ;;  %v731_v0 = vpack.c.bf16 %v69_v59, %v68_v58 }
  0x22   :  { %756 = vmatprep.subr.bf16.mxu1 %v755_v43  ;;  %v761_v63 = vpack.c.bf16 %v83_v57, %v82_v55  ;;  %v52_v1 = vld [vmem:[%s1281_s1 + $0x50] sm:$0xff]  ;;  %v53_v2 = vld [vmem:[%s1281_s1 + $0x58] sm:$0xff]  ;;  %v763_v4 = vpack.c.bf16 %v101_v61, %v100_v60  ;;  %v70_v6 = vld [vmem:[%s1281_s1 + $0xe0] sm:$0xff]  ;;  %v894_v60 = vmov 0.0  }
  0x23   :  { %726 = vmatpush3.bf16.msra.mxu0 %v725_v48  ;;  %v84_v3 = vld [vmem:[%s1281_s1 + $0x150] sm:$0xff]  ;;  %v85_v5 = vld [vmem:[%s1281_s1 + $0x158] sm:$0xff]  ;;  %v71_v7 = vld [vmem:[%s1281_s1 + $0xe8] sm:$0xff]  ;;  %v733_v10 = vpack.c.bf16 %v53_v2, %v52_v1 }
  0x24   :  { %728 = vmatprep.subr.bf16.mxu0 %v727_v52  ;;  %v102_v8 = vld [vmem:[%s1281_s1 + $0x1e0] sm:$0xff]  ;;  %v103_v9 = vld [vmem:[%s1281_s1 + $0x1e8] sm:$0xff]  ;;  %v765_v13 = vpack.c.bf16 %v85_v5, %v84_v3  ;;  %v735_v14 = vpack.c.bf16 %v71_v7, %v70_v6  ;;  %v72_v19 = vld [vmem:[%s1281_s1 + $0xf0] sm:$0xff] }
  0x25   :  { %758 = vmatpush3.bf16.msra.mxu1 %v757_v51  ;;  %v54_v11 = vld [vmem:[%s1281_s1 + $0x60] sm:$0xff]  ;;  %v36_v12 = vld [vmem:[%s1280_s0 + $0x8] sm:$0xff]  ;;  %v767_v18 = vpack.c.bf16 %v103_v9, %v102_v8  ;;  %v73_v20 = vld [vmem:[%s1281_s1 + $0xf8] sm:$0xff] }
  0x26   :  { %760 = vmatprep.subr.bf16.mxu1 %v759_v56  ;;  %v55_v15 = vld [vmem:[%s1281_s1 + $0x68] sm:$0xff]  ;;  %v86_v16 = vld [vmem:[%s1281_s1 + $0x160] sm:$0xff]  ;;  %215 = vmatprep.mubr.f32.mxu0 %v36_v12  ;;  %v38_v21 = vld [vmem:[%s1280_s0 + $0x18] sm:$0xff]  ;;  %v739_v26 = vpack.c.bf16 %v73_v20, %v72_v19 }
  0x27   :  { %730 = vmatpush3.bf16.msra.mxu0 %v729_v62  ;;  %v87_v17 = vld [vmem:[%s1281_s1 + $0x168] sm:$0xff]  ;;  %v104_v22 = vld [vmem:[%s1281_s1 + $0x1f0] sm:$0xff]  ;;  %v105_v23 = vld [vmem:[%s1281_s1 + $0x1f8] sm:$0xff]  ;;  %285 = vmatprep.mubr.f32.mxu1 %v38_v21  ;;  %v737_v24 = vpack.c.bf16 %v55_v15, %v54_v11 }
  0x28   :  { %732 = vmatprep.subr.bf16.mxu0 %v731_v0  ;;  %v769_v25 = vpack.c.bf16 %v87_v17, %v86_v16  ;;  %v56_v27 = vld [vmem:[%s1281_s1 + $0x70] sm:$0xff]  ;;  %v57_v28 = vld [vmem:[%s1281_s1 + $0x78] sm:$0xff]  ;;  %v771_v30 = vpack.c.bf16 %v105_v23, %v104_v22  ;;  %v122_v32 = vld [vmem:[%s1281_s1 + $0x280] sm:$0xff] }
  0x29   :  { %762 = vmatpush3.bf16.msra.mxu1 %v761_v63  ;;  %v88_v29 = vld [vmem:[%s1281_s1 + $0x170] sm:$0xff]  ;;  %v89_v31 = vld [vmem:[%s1281_s1 + $0x178] sm:$0xff]  ;;  %v123_v33 = vld [vmem:[%s1281_s1 + $0x288] sm:$0xff]  ;;  %v741_v34 = vpack.c.bf16 %v57_v28, %v56_v27 }
  0x2a   :  { %764 = vmatprep.subr.bf16.mxu1 %v763_v4  ;;  %v773_v35 = vpack.c.bf16 %v89_v31, %v88_v29  ;;  %v775_v36 = vpack.c.bf16 %v123_v33, %v122_v32  ;;  %v106_v37 = vld [vmem:[%s1281_s1 + $0x200] sm:$0xff]  ;;  %v107_v38 = vld [vmem:[%s1281_s1 + $0x208] sm:$0xff]  ;;  %v124_v39 = vld [vmem:[%s1281_s1 + $0x290] sm:$0xff] }
  0x2b   :  { %734 = vmatpush3.bf16.msra.mxu0 %v733_v10  ;;  %v125_v40 = vld [vmem:[%s1281_s1 + $0x298] sm:$0xff]  ;;  %v35_v41 = vld [vmem:[%s1280_s0] sm:$0xff]  ;;  %v777_v42 = vpack.c.bf16 %v107_v38, %v106_v37  ;;  %v37_v43 = vld [vmem:[%s1280_s0 + $0x10] sm:$0xff] }
  0x2c   :  { %736 = vmatprep.subr.bf16.mxu0 %v735_v14  ;;  %v108_v44 = vld [vmem:[%s1281_s1 + $0x210] sm:$0xff]  ;;  %v779_v45 = vpack.c.bf16 %v125_v40, %v124_v39  ;;  %v109_v46 = vld [vmem:[%s1281_s1 + $0x218] sm:$0xff]  ;;  %v126_v47 = vld [vmem:[%s1281_s1 + $0x2a0] sm:$0xff] }
  0x2d   :  { %766 = vmatpush3.bf16.msra.mxu1 %v765_v13  ;;  %v127_v48 = vld [vmem:[%s1281_s1 + $0x2a8] sm:$0xff]  ;;  %v138_v51 = vld [vmem:[%s1281_s1 + $0x300] sm:$0xff]  ;;  %v781_v54 = vpack.c.bf16 %v109_v46, %v108_v44  ;;  %v128_v58 = vld [vmem:[%s1281_s1 + $0x2b0] sm:$0xff] }
  0x2e   :  { %768 = vmatprep.subr.bf16.mxu1 %v767_v18  ;;  %v40_v49 = vld [vmem:[%s1280_s0 + $0x28] sm:$0xff]  ;;  %v783_v55 = vpack.c.bf16 %v127_v48, %v126_v47  ;;  %v110_v56 = vld [vmem:[%s1281_s1 + $0x220] sm:$0xff]  ;;  %v129_v59 = vld [vmem:[%s1281_s1 + $0x2b8] sm:$0xff] }
  0x2f   :  { %738 = vmatpush3.bf16.msra.mxu0 %v737_v24  ;;  %v139_v52 = vld [vmem:[%s1281_s1 + $0x308] sm:$0xff]  ;;  %v41_v61 = vld [vmem:[%s1280_s0 + $0x30] sm:$0xff]  ;;  %v787_v63 = vpack.c.bf16 %v129_v59, %v128_v58  ;;  %v113_v1 = vld [vmem:[%s1281_s1 + $0x238] sm:$0xff] }
  0x30   :  { %740 = vmatprep.subr.bf16.mxu0 %v739_v26  ;;  %v808_v53 = vpack.c.bf16 %v139_v52, %v138_v51  ;;  %v111_v57 = vld [vmem:[%s1281_s1 + $0x228] sm:$0xff]  ;;  %v112_v0 = vld [vmem:[%s1281_s1 + $0x230] sm:$0xff]  ;;  %v130_v2 = vld [vmem:[%s1281_s1 + $0x2c0] sm:$0xff] }
  0x31   :  { %770 = vmatpush3.bf16.msra.mxu1 %v769_v25  ;;  %v785_v62 = vpack.c.bf16 %v111_v57, %v110_v56  ;;  %v131_v3 = vld [vmem:[%s1281_s1 + $0x2c8] sm:$0xff]  ;;  %v789_v4 = vpack.c.bf16 %v113_v1, %v112_v0  ;;  %v114_v6 = vld [vmem:[%s1281_s1 + $0x240] sm:$0xff]  ;;  %v132_v8 = vld [vmem:[%s1281_s1 + $0x2d0] sm:$0xff] }
  0x32   :  { %772 = vmatprep.subr.bf16.mxu1 %v771_v30  ;;  %v791_v5 = vpack.c.bf16 %v131_v3, %v130_v2  ;;  %v115_v7 = vld [vmem:[%s1281_s1 + $0x248] sm:$0xff]  ;;  %v133_v9 = vld [vmem:[%s1281_s1 + $0x2d8] sm:$0xff]  ;;  %v116_v12 = vld [vmem:[%s1281_s1 + $0x250] sm:$0xff] }
  0x33   :  { %742 = vmatpush3.bf16.msra.mxu0 %v741_v34  ;;  %v793_v10 = vpack.c.bf16 %v115_v7, %v114_v6  ;;  %v795_v11 = vpack.c.bf16 %v133_v9, %v132_v8  ;;  %v117_v13 = vld [vmem:[%s1281_s1 + $0x258] sm:$0xff]  ;;  %v134_v14 = vld [vmem:[%s1281_s1 + $0x2e0] sm:$0xff]  ;;  %v135_v15 = vld [vmem:[%s1281_s1 + $0x2e8] sm:$0xff] }
  0x34   :  { %776 = vmatprep.subr.bf16.mxu0 %v775_v36  ;;  %v797_v16 = vpack.c.bf16 %v117_v13, %v116_v12  ;;  %v799_v17 = vpack.c.bf16 %v135_v15, %v134_v14  ;;  %v118_v18 = vld [vmem:[%s1281_s1 + $0x260] sm:$0xff]  ;;  %v119_v19 = vld [vmem:[%s1281_s1 + $0x268] sm:$0xff]  ;;  %v136_v20 = vld [vmem:[%s1281_s1 + $0x2f0] sm:$0xff] }
  0x35   :  { %774 = vmatpush3.bf16.msra.mxu1 %v773_v35  ;;  %v137_v21 = vld [vmem:[%s1281_s1 + $0x2f8] sm:$0xff]  ;;  %v801_v22 = vpack.c.bf16 %v119_v19, %v118_v18  ;;  %v120_v24 = vld [vmem:[%s1281_s1 + $0x270] sm:$0xff]  ;;  %v39_v27 = vld [vmem:[%s1280_s0 + $0x20] sm:$0xff] }
  0x36   :  { %807 = vmatprep.subr.bf16.mxu1 %v892_v50  ;;  %216 = vmatmul.mubr.f32.vlgmr.msra.gmra.mrb[0].mxu0 %v35_v41  ;;  %v803_v23 = vpack.c.bf16 %v137_v21, %v136_v20  ;;  %v121_v25 = vld [vmem:[%s1281_s1 + $0x278] sm:$0xff]  ;;  %v432_v28 = vld [vmem:[#allocation2] sm:$0xff]  ;;  %v434_v30 = vld [vmem:[#allocation2 + $0x10] sm:$0xff] }
  0x37   :  { %778 = vmatpush3.bf16.msra.mxu0 %v777_v42  ;;  %355 = vmatprep.mubr.f32.mxu0 %v40_v49  ;;  %v805_v26 = vpack.c.bf16 %v121_v25, %v120_v24  ;;  %v433_v29 = vld [vmem:[#allocation2 + $0x8] sm:$0xff]  ;;  %v435_v32 = vld [vmem:[#allocation2 + $0x18] sm:$0xff]  ;;  %v436_v34 = vld [vmem:[#allocation2 + $0x20] sm:$0xff] }
  0x38   :  { %286 = vmatmul.mubr.f32.vlgmr.msra.gmra.mrb[0].mxu1 %v37_v43  ;;  %780 = vmatprep.subr.bf16.mxu0 %v779_v45  ;;  %v811_v31 = vpack.c.bf16 %v433_v29, %v432_v28  ;;  %v814_v33 = vpack.c.bf16 %v435_v32, %v434_v30  ;;  %v437_v35 = vld [vmem:[#allocation2 + $0x28] sm:$0xff]  ;;  %v438_v37 = vld [vmem:[#allocation2 + $0x30] sm:$0xff]  ;;  %v439_v38 = vld [vmem:[#allocation2 + $0x38] sm:$0xff] }
  0x39   :  { %809 = vmatpush3.bf16.msra.mxu1 %v808_v53  ;;  %673 = vmatprep.mubr.msk.f32.mxu1 %vm893_vm0, %v894_v60  ;;  %v817_v36 = vpack.c.bf16 %v437_v35, %v436_v34  ;;  %v820_v39 = vpack.c.bf16 %v439_v38, %v438_v37  ;;  %v440_v40 = vld [vmem:[#allocation2 + $0x40] sm:$0xff]  ;;  %v441_v41 = vld [vmem:[#allocation2 + $0x48] sm:$0xff]  ;;  %v442_v43 = vld [vmem:[#allocation2 + $0x50] sm:$0xff] }
  0x3a   :  { %810 = vmatprep.subr.bf16.mxu1 %v892_v50  ;;  %v823_v42 = vpack.c.bf16 %v441_v41, %v440_v40  ;;  %v443_v44 = vld [vmem:[#allocation2 + $0x58] sm:$0xff]  ;;  %v444_v46 = vld [vmem:[#allocation2 + $0x60] sm:$0xff]  ;;  %v445_v47 = vld [vmem:[#allocation2 + $0x68] sm:$0xff] }
  0x3b   :  { %782 = vmatpush3.bf16.msra.mxu0 %v781_v54  ;;  %v826_v45 = vpack.c.bf16 %v443_v44, %v442_v43  ;;  %v829_v48 = vpack.c.bf16 %v445_v47, %v444_v46  ;;  %v446_v49 = vld [vmem:[#allocation2 + $0x70] sm:$0xff]  ;;  %v447_v51 = vld [vmem:[#allocation2 + $0x78] sm:$0xff] }
  0x3c   :  { %784 = vmatprep.subr.bf16.mxu0 %v783_v55  ;;  %674 = vmatmul.mubr.msk.f32.vlgmr.msra.gmra.mrb[2].mxu1 %vm147_vm1, %v41_v61  ;;  %v832_v52 = vpack.c.bf16 %v447_v51, %v446_v49  ;;  %v541_v54 = vld [vmem:[%s1282_s2] ss:$0 sm:$0xff]  ;;  %s895_s2 = smov [#allocation5]  }
  0x3d   :  { %708 = vmatprep.mubr.msk.f32.mxu1 %vm893_vm0, %v894_v60  ;;  %812 = vmatpush3.bf16.msra.mxu1 %v811_v31  ;;  %s532_s11 = sshll.u32 %s895_s2, 4  ;;  %s533_s11 = int_to_ptr.vmem [resolvable:$true] %s532_s11 }
  0x3e   :  { %813 = vmatprep.subr.bf16.mxu1 %v892_v50  ;;  %s863_s12 = scalar_lea.vmem %s533_s11, 128  ;;  %p868_p9 = scmp.lt.s32.totalorder %s533_s11, %s533_s11 }
  0x3f   :  { %786 = vmatpush3.bf16.msra.mxu0 %v785_v62  ;;  %p864_p8 = scmp.ne.s32.totalorder %s533_s11, %s863_s12  ;;  %p869_p10 = scmp.lt.s32.totalorder %s863_s12, %s863_s12 }
  0x40   :  { %788 = vmatprep.subr.bf16.mxu0 %v787_v63 }
  0x41   :  { %815 = vmatpush3.bf16.msra.mxu1 %v814_v33  ;;  %p870_p11 = por %p869_p10, %p868_p9 }
  0x42   :  { %816 = vmatprep.subr.bf16.mxu1 %v892_v50 }
  0x43   :  { %790 = vmatpush3.bf16.msra.mxu0 %v789_v4  ;;  %p871_p12 = pnand %p870_p11, %p864_p8 }
  0x44   :  { %792 = vmatprep.subr.bf16.mxu0 %v791_v5  ;;  %v543_v5 = vld [vmem:[%s1284_s4] ss:$0 sm:$0xff] }
  0x45   :  { %818 = vmatpush3.bf16.msra.mxu1 %v817_v36 }
  0x46   :  { %819 = vmatprep.subr.bf16.mxu1 %v892_v50 }
  0x47   :  { %794 = vmatpush3.bf16.msra.mxu0 %v793_v10 }
  0x48   :  { %796 = vmatprep.subr.bf16.mxu0 %v795_v11 }
  0x49   :  { %821 = vmatpush3.bf16.msra.mxu1 %v820_v39 }
  0x4a   :  { %822 = vmatprep.subr.bf16.mxu1 %v892_v50 }
  0x4b   :  { %798 = vmatpush3.bf16.msra.mxu0 %v797_v16 }
  0x4c   :  { %800 = vmatprep.subr.bf16.mxu0 %v799_v17 }
  0x4d   :  { %824 = vmatpush3.bf16.msra.mxu1 %v823_v42 }
  0x4e   :  { %825 = vmatprep.subr.bf16.mxu1 %v892_v50 }
  0x4f   :  { %802 = vmatpush3.bf16.msra.mxu0 %v801_v22 }
  0x50   :  { %804 = vmatprep.subr.bf16.mxu0 %v803_v23 }
  0x51   :  { %827 = vmatpush3.bf16.msra.mxu1 %v826_v45 }
  0x52   :  { %828 = vmatprep.subr.bf16.mxu1 %v892_v50 }
  0x53   :  { %806 = vmatpush3.bf16.msra.mxu0 %v805_v26 }
  0x55   :  { %830 = vmatpush3.bf16.msra.mxu1 %v829_v48 }
  0x56   :  { %356 = vmatmul.mubr.f32.vlgmr.msra.gmra.mrb[2].mxu0 %v39_v27  ;;  %831 = vmatprep.subr.bf16.mxu1 %v892_v50 }
  0x59   :  { %833 = vmatpush3.bf16.msra.mxu1 %v832_v52 }
 0x109   :  { %v576_v53 = vpop.f32.mrb[0].mxu0 }
 0x10a   :  { %v577_v55 = vpop.f32.mrb[1].mxu0 }
 0x10b   :  { %v611_v56 = vpop.f32.mrb[0].mxu1  ;;  %v578_v57 = vadd.f32 %v577_v55, %v576_v53 }
 0x10c   :  { %v612_v58 = vpop.f32.mrb[1].mxu1 }
 0x10d   :  { %v613_v59 = vadd.f32 %v612_v58, %v611_v56  ;;  %v218_v60 = vadd.f32 %v578_v57, %v541_v54 }
 0x10f   :  { %v288_v61 = vadd.f32 %v613_v59, %v218_v60  ;;  %v427_v62 = vpop.f32.mrb[2].mxu1 }
 0x110   :  { %v675_v63 = vpop.f32.mrb[3].mxu1 }
 0x129   :  { %v646_v0 = vpop.f32.mrb[2].mxu0 }
 0x12a   :  { %v647_v50 = vpop.f32.mrb[3].mxu0 }
 0x12b   :  { %v648_v1 = vadd.f32 %v647_v50, %v646_v0 }
 0x12d   :  { %v358_v2 = vadd.f32 %v648_v1, %v288_v61 }
 0x12f   :  { %v428_v3 = vadd.f32 %v427_v62, %v358_v2 }
 0x131   :  { %v431_v4 = vmax.f32 %v428_v3, 0.0 }
 0x133   :  { %709 = vmatmul.mubr.f32.vlgmr.msra.gmra.mrb[4].mxu1 %v431_v4 }
 0x206   :  { %v521_v6 = vpop.f32.mrb[4].mxu1 }
 0x207   :  { %v522_v7 = vadd.f32 %v543_v5, %v521_v6  ;;  %v710_v8 = vpop.f32.mrb[5].mxu1 }
 0x209   :  { %525 = vst [vmem:[#allocation5] sm:$0xff] %v522_v7 }
 0x20a   :  { %874 = shalt.err (!%p871_p12)
}
 0x20b   :  { %s875_s3 = scalar_lea.hbm %s1285_s5, 128 }
 0x20c   :  { %p876_p13 = scmp.ne.s32.totalorder %s1285_s5, %s875_s3  ;;  %p879_p0 = scmp.lt.u32.totalorder %s875_s3, %s1285_s5 }
 0x20e   :  { %p881_p1 = pnand %p879_p0, %p876_p13 }
 0x210   :  { %884 = shalt.err (!%p881_p1)
}
 0x211   :  { %535 = dma.vmem_to_hbm [thread:$0]  %s533_s11, 128, %s1285_s5, [#allocation4]  }
 0x212   :  { %887 = dma.done.wait [#allocation4], 128  }
 0x213   :  { %888 = vsyncadd [#allocation4], 4294967168 }
 0x214   :  { %539 = vsyncpa [#allocation3], 1 }
 0x215   :  { %540 = vsyncpa [#allocation4], 1 }

</bundles_post_ra>
